<compile_context>
chip_gen: v7x
topology: tpu7x:2x2x1
jax: 0.10.0
libtpu: 0.0.40
codegen_flags: <defaults>
</compile_context>

<pallas_src>
import jax
import jax.numpy as jnp
from jax.experimental import pallas as pl
from jax.experimental.pallas import tpu as pltpu

_LANES = 128               # vreg lane width
_SUBLANES = 8              # vreg sublane count (f32)
_MAX_TILE_ROWS = 4096      # 4096 x 128 f32 = 2 MiB per buffer; in+out double-
                           # buffered = 8 MiB, under every generation's scoped
                           # VMEM default (16 MiB on v5e, 32 MiB on v6e/v7x).
_TARGET_GRID_STEPS = 8     # keep >= ~8 grid steps so read/write DMAs overlap
                           # and v7x gets >= 2 steps per TensorCore.
_XLA_FALLBACK_ELEMS = 1 << 17  # below ~128K scalars, let XLA fuse it instead.


def _round_up(a, b):
    return ((a + b - 1) // b) * b


def _scale_shift_kernel(w_ref, b_ref, x_ref, o_ref):
    # w_ref / b_ref: (1,) f32 scalars in SMEM.
    # x_ref / o_ref: (tm, 128) tiles in VMEM, in the input's native dtype.
    xf = x_ref[...].astype(jnp.float32)
    o_ref[...] = (xf * w_ref[0] + b_ref[0]).astype(o_ref.dtype)


def linear_1x1(x, weight, bias, *, force_pallas=False):
    """y = x @ weight.T + bias with weight (1,1), bias (1,):  y = x * w + b.

    x: (N, 1). Returns (N, 1) with x's dtype.
    """
    n = x.shape[0]
    assert x.shape[-1] == 1 and weight.shape == (1, 1) and bias.shape == (1,)
    out_dtype = x.dtype
    w = weight.reshape(1).astype(jnp.float32)
    b = bias.reshape(1).astype(jnp.float32)

    # For small/medium batches the pallas_call launch cost plus any wrapper
    # reshape/pad passes dominate; XLA's fused scale-and-shift already runs at
    # HBM roofline there, so fall back unless the caller forces the kernel.
    if n < _XLA_FALLBACK_ELEMS and not force_pallas:
        return (x.astype(jnp.float32) * w[0] + b[0]).astype(out_dtype)

    # Lane-dense layout: view the N scalars as (rows, 128).  If N is already a
    # multiple of 128 this is a pure (zero-copy) reshape; otherwise pad the
    # minimal amount (< 128 elements, or up to one (8,128) tile for tiny N).
    rows = pl.cdiv(n, _LANES)
    rows = max(rows, _SUBLANES)          # tiny inputs -> one full (8,128) tile
    padded = rows * _LANES

    flat = x.reshape(-1)                 # keep native dtype in HBM
    if padded != n:
        flat = jnp.pad(flat, (0, padded - n))
    x2d = flat.reshape(rows, _LANES)

    # Tile size: as large as possible (amortize per-step overhead) while still
    # keeping a multi-step grid for DMA overlap / megacore on v7x.
    tm = max(_SUBLANES, pl.cdiv(rows, _TARGET_GRID_STEPS))
    tm = min(_MAX_TILE_ROWS, _round_up(tm, _SUBLANES))
    tm = min(tm, (rows // _SUBLANES) * _SUBLANES)   # never exceed the array
    grid = (pl.cdiv(rows, tm),)          # last block may be partial -> masked

    y2d = pl.pallas_call(
        _scale_shift_kernel,
        out_shape=jax.ShapeDtypeStruct((rows, _LANES), out_dtype),
        grid_spec=pltpu.PrefetchScalarGridSpec(
            num_scalar_prefetch=0,
            grid=grid,
            in_specs=[
                pl.BlockSpec(memory_space=pltpu.MemorySpace.SMEM),   # weight (1,)
                pl.BlockSpec(memory_space=pltpu.MemorySpace.SMEM),   # bias   (1,)
                pl.BlockSpec((tm, _LANES), lambda i: (i, 0)),        # x tile
            ],
            out_specs=pl.BlockSpec((tm, _LANES), lambda i: (i, 0)),  # y tile
        ),
        compiler_params=pltpu.CompilerParams(
            dimension_semantics=("parallel",),
        ),
    )(w, b, x2d)

    # Restore the logical (N, 1) view.  For N % 128 == 0 these are zero-copy
    # reshapes; for ragged N we slice off the pad region (its values are w*pad
    # garbage / bias and never observed).
    y = y2d.reshape(-1)
    if padded != n:
        y = y[:n]
    return y.reshape(n, 1)


if __name__ == "__main__":
    key = jax.random.PRNGKey(0)
    k_w, k_b, k_x1, k_x2, k_x3 = jax.random.split(key, 5)

    # Deterministic params matching torch.nn.Linear(1, 1) init range U(-1, 1)
    # (bound = 1/sqrt(in_features) = 1).
    weight = jax.random.uniform(k_w, (1, 1), jnp.float32, minval=-1.0, maxval=1.0)
    bias = jax.random.uniform(k_b, (1,), jnp.float32, minval=-1.0, maxval=1.0)

    # Small batch consistent with the module (in_features = 1), forced through
    # the Pallas kernel (single (8,128) tile after lane-dense padding).
    x_small = jax.random.normal(k_x1, (8, 1), jnp.float32)
    y_small = linear_1x1(x_small, weight, bias, force_pallas=True)
    jax.block_until_ready(y_small)
    ref_small = x_small @ weight.T + bias
    assert y_small.shape == (8, 1)
    assert jnp.allclose(y_small, ref_small, atol=1e-6), "small-batch mismatch"

    # 128-aligned batch: zero-copy wrapper path (no pad, no slice), multi-tile grid.
    x_aligned = jax.random.normal(k_x2, (8192, 1), jnp.float32)
    y_aligned = linear_1x1(x_aligned, weight, bias, force_pallas=True)
    jax.block_until_ready(y_aligned)
    ref_aligned = x_aligned @ weight.T + bias
    assert y_aligned.shape == (8192, 1)
    assert jnp.allclose(y_aligned, ref_aligned, atol=1e-6), "aligned-batch mismatch"

    # Ragged batch exercising the pipelined multi-tile path + partial last block.
    x_big = jax.random.normal(k_x3, (70_001, 1), jnp.float32)
    y_big = linear_1x1(x_big, weight, bias, force_pallas=True)
    jax.block_until_ready(y_big)
    ref_big = x_big @ weight.T + bias
    assert y_big.shape == (70_001, 1)
    assert jnp.allclose(y_big, ref_big, atol=1e-6), "large-batch mismatch"

    # XLA fallback path (small N, not forced) must agree too.
    y_fb = linear_1x1(x_small, weight, bias)
    jax.block_until_ready(y_fb)
    assert jnp.allclose(y_fb, ref_small, atol=1e-6), "fallback mismatch"

    print("KERNEL_OK")
</pallas_src>

<mosaic_0001>
module attributes {stable_mosaic.version = 11 : i64} {
  func.func @_scale_shift_kernel(%arg0: i32, %arg1: memref<1xf32, #tpu.memory_space<smem>>, %arg2: memref<1xf32, #tpu.memory_space<smem>>, %arg3: memref<8x128xf32, #tpu.memory_space<vmem>>, %arg4: memref<8x128xf32, #tpu.memory_space<vmem>>) attributes {dimension_semantics = [#tpu.dimension_semantics<parallel>], iteration_bounds = array<i64: 1>, scalar_prefetch = 0 : i64, scratch_operands = 0 : i64, tpu.core_type = #tpu.core_type<tc>, window_params = [{transform_indices = @transform_0, window_bounds = array<i64: 1>}, {transform_indices = @transform_1, window_bounds = array<i64: 1>}, {transform_indices = @transform_2, window_bounds = array<i64: 8, 128>}, {transform_indices = @transform_3, window_bounds = array<i64: 8, 128>}]} {
    %c0 = arith.constant 0 : index
    %c0_0 = arith.constant 0 : index
    %0 = vector.load %arg3[%c0, %c0_0] : memref<8x128xf32, #tpu.memory_space<vmem>>, vector<8x128xf32>
    %c0_1 = arith.constant 0 : index
    %1 = memref.load %arg1[%c0_1] : memref<1xf32, #tpu.memory_space<smem>>
    %2 = vector.broadcast %1 : f32 to vector<8x128xf32>
    %3 = arith.mulf %0, %2 : vector<8x128xf32>
    %c0_2 = arith.constant 0 : index
    %4 = memref.load %arg2[%c0_2] : memref<1xf32, #tpu.memory_space<smem>>
    %5 = vector.broadcast %4 : f32 to vector<8x128xf32>
    %6 = arith.addf %3, %5 : vector<8x128xf32>
    %c0_3 = arith.constant 0 : index
    %c0_4 = arith.constant 0 : index
    %7 = vector.load %arg4[%c0_3, %c0_4] : memref<8x128xf32, #tpu.memory_space<vmem>>, vector<8x128xf32>
    tpu.vector_store %arg4[%c0_3, %c0_4], %6 {strides = array<i32>} : memref<8x128xf32, #tpu.memory_space<vmem>>, vector<8x128xf32>,
    return
  }
  func.func @transform_0(%arg0: i32) -> i32 {
    %c0_i32 = arith.constant 0 : i32
    %c0_i32_0 = arith.constant 0 : i32
    return %c0_i32 : i32
  }
  func.func @transform_1(%arg0: i32) -> i32 {
    %c0_i32 = arith.constant 0 : i32
    %c0_i32_0 = arith.constant 0 : i32
    return %c0_i32 : i32
  }
  func.func @transform_2(%arg0: i32) -> (i32, i32) {
    %c0_i32 = arith.constant 0 : i32
    %c0_i32_0 = arith.constant 0 : i32
    return %arg0, %c0_i32 : i32, i32
  }
  func.func @transform_3(%arg0: i32) -> (i32, i32) {
    %c0_i32 = arith.constant 0 : i32
    %c0_i32_0 = arith.constant 0 : i32
    return %arg0, %c0_i32 : i32, i32
  }
}

</mosaic_0001>

<bundles_post_ra>
// kernel: tpu_custom_call.1
= control target key start
LH: loop header
LB: loop body
LE: loop exit
PB: predicated region body
PF: predicated region fallthrough
CT: control target
= control target key end

     0   :  { %10 = vsyncpa [#allocation5], 0  ;;  %s154_s0 = inlined_call_operand.<no memory space> [shape: f32[1], index: 0, kind: input, shape index: {}]   ;;  %s155_s1 = inlined_call_operand.<no memory space> [shape: f32[1], index: 1, kind: input, shape index: {}]   ;;  %s156_s2 = inlined_call_operand.hbm [shape: f32[8,128], index: 2, kind: input, shape index: {}]   ;;  %s157_s3 = inlined_call_operand.hbm [shape: f32[8,128], index: 3, kind: output, shape index: {}]  }
   0x1   :  { %11 = vsyncpa [#allocation6], 0  ;;  %s102_s12 = smov [#allocation4]   ;;  %s54_s16 = scalar_lea.hbm %s156_s2, 128 }
   0x2   :  { %s22_s13 = sshll.u32 %s102_s12, 4  ;;  %p55_p0 = scmp.ne.s32.totalorder %s156_s2, %s54_s16  ;;  %s23_s13 = int_to_ptr.vmem [resolvable:$true] %s22_s13 }
   0x3   :  { %p58_p1 = scmp.lt.u32.totalorder %s54_s16, %s156_s2 }
   0x5   :  { %p60_p2 = pnand %p58_p1, %p55_p0 }
   0x7   :  { %63 = shalt.err (!%p60_p2)
}
   0x8   :  { %s64_s21 = scalar_lea.vmem %s23_s13, 128  ;;  %p69_p4 = scmp.lt.s32.totalorder %s23_s13, %s23_s13 }
   0x9   :  { %p65_p3 = scmp.ne.s32.totalorder %s23_s13, %s64_s21  ;;  %p70_p5 = scmp.lt.s32.totalorder %s64_s21, %s64_s21 }
   0xb   :  { %p71_p6 = por %p70_p5, %p69_p4 }
   0xd   :  { %p72_p7 = pnand %p71_p6, %p65_p3 }
   0xf   :  { %75 = shalt.err (!%p72_p7)
}
  0x10   :  { %25 = dma.hbm_to_vmem [thread:$0]  %s156_s2, 128, %s23_s13, [#allocation5]  }
  0x11   :  { %98 = dma.done.wait [#allocation5], 128  }
  0x12   :  { %99 = vsyncadd [#allocation5], 4294967168  ;;  %v31_v0 = vstv %s154_s0  ;;  %v29_v1 = vld [vmem:[#allocation4] sm:$0xff]  ;;  %v34_v2 = vstv %s155_s1  ;;  %s103_s28 = smov [#allocation7]  }
  0x13   :  { %s43_s29 = sshll.u32 %s103_s28, 4  ;;  %v32_v3 = vmul.f32 %v31_v0, %v29_v1  ;;  %s44_s29 = int_to_ptr.vmem [resolvable:$true] %s43_s29 }
  0x14   :  { %s76_s30 = scalar_lea.vmem %s44_s29, 128  ;;  %p81_p9 = scmp.lt.s32.totalorder %s44_s29, %s44_s29 }
  0x15   :  { %v35_v4 = vadd.f32 %v34_v2, %v32_v3  ;;  %p77_p8 = scmp.ne.s32.totalorder %s44_s29, %s76_s30  ;;  %p82_p10 = scmp.lt.s32.totalorder %s76_s30, %s76_s30 }
  0x17   :  { %36 = vst [vmem:[#allocation7] sm:$0xff] %v35_v4  ;;  %p83_p11 = por %p82_p10, %p81_p9 }
  0x19   :  { %p84_p12 = pnand %p83_p11, %p77_p8 }
  0x1b   :  { %87 = shalt.err (!%p84_p12)
}
  0x1c   :  { %s88_s4 = scalar_lea.hbm %s157_s3, 128 }
  0x1d   :  { %p89_p13 = scmp.ne.s32.totalorder %s157_s3, %s88_s4  ;;  %p92_p0 = scmp.lt.u32.totalorder %s88_s4, %s157_s3 }
  0x1f   :  { %p94_p1 = pnand %p92_p0, %p89_p13 }
  0x21   :  { %97 = shalt.err (!%p94_p1)
}
  0x22   :  { %46 = dma.vmem_to_hbm [thread:$0]  %s44_s29, 128, %s157_s3, [#allocation6]  }
  0x23   :  { %100 = dma.done.wait [#allocation6], 128  }
  0x24   :  { %101 = vsyncadd [#allocation6], 4294967168 }
  0x25   :  { %50 = vsyncpa [#allocation5], 1 }
  0x26   :  { %51 = vsyncpa [#allocation6], 1 }

</bundles_post_ra>
